<compile_context>
chip_gen: v7x
topology: tpu7x:2x2x1
jax: 0.10.0
libtpu: 0.0.40
codegen_flags: <defaults>
</compile_context>

<pallas_src>
import functools

import jax
import jax.numpy as jnp
from jax import lax
from jax.experimental import pallas as pl
from jax.experimental.pallas import tpu as pltpu


def _round_up(x, m):
    return (x + m - 1) // m * m


# ---------------------------------------------------------------------------
# Stage 1: fused Q/K/V projection.
# ---------------------------------------------------------------------------
def _qkv_proj_kernel(x_ref, w_ref, q_ref, k_ref, v_ref, *, ones_col):
    """x (TS, d_in_p) @ w (d_in_p, 2*d_p + d_v_p) -> Q, K, V tiles (MXU dtype)."""
    d_p = q_ref.shape[-1]
    mxu_dtype = q_ref.dtype
    qkv = jnp.dot(x_ref[...].astype(mxu_dtype), w_ref[...],
                  preferred_element_type=jnp.float32)
    q_ref[...] = qkv[:, :d_p].astype(q_ref.dtype)            # pre-scaled Q
    k_ref[...] = qkv[:, d_p:2 * d_p].astype(k_ref.dtype)
    v = qkv[:, 2 * d_p:]
    # Ones column in V's zero padding: P @ V then also accumulates sum_j p_ij
    # (the softmax denominator) at lane `ones_col` for free on the MXU.
    col = lax.broadcasted_iota(jnp.int32, v.shape, 1)
    v = jnp.where(col == ones_col, 1.0, v)
    v_ref[...] = v.astype(v_ref.dtype)


# ---------------------------------------------------------------------------
# Stage 2: flash attention with online softmax.
# ---------------------------------------------------------------------------
def _flash_attn_kernel(bias_ref, q_ref, k_ref, v_ref, o_ref,
                       m_scr, acc_scr, *, ones_col, apply_mask):
    kv_idx = pl.program_id(1)

    @pl.when(kv_idx == 0)
    def _init():
        m_scr[...] = jnp.full_like(m_scr, -jnp.inf)
        acc_scr[...] = jnp.zeros_like(acc_scr)

    # (TQ, TK) scores: bf16 MXU operands, f32 accumulation; contract the last
    # dims directly (no keys.T / XLU transpose).  Q carries the 1/sqrt(d_out).
    s = lax.dot_general(q_ref[...], k_ref[...], (((1,), (1,)), ((), ())),
                        preferred_element_type=jnp.float32)
    if apply_mask:
        # Additive key-padding bias (0 on valid keys, -inf on padded keys):
        # a single broadcast VALU add instead of iota + compare + select.
        s = s + bias_ref[...]

    # Online softmax update (f32 element-wise math; v5e has no bf16 VPU/EUP).
    m_prev = m_scr[...]
    m_new = jnp.maximum(m_prev, jnp.max(s, axis=-1, keepdims=True))
    alpha = jnp.exp(m_prev - m_new)
    p = jnp.exp(s - m_new)
    # V carries a ones column at lane `ones_col`, so this matmul also
    # accumulates the softmax denominator into acc[:, ones_col].
    acc_scr[...] = alpha * acc_scr[...] + jnp.dot(
        p.astype(v_ref.dtype), v_ref[...], preferred_element_type=jnp.float32)
    m_scr[...] = m_new

    @pl.when(kv_idx == pl.num_programs(1) - 1)
    def _finalize():
        acc = acc_scr[...]
        lane = lax.broadcasted_iota(jnp.int32, acc.shape, 1)
        l = jnp.sum(jnp.where(lane == ones_col, acc, 0.0), axis=-1, keepdims=True)
        inv_l = pl.reciprocal(l, approx=False)     # exact; once per q block
        o_ref[...] = (acc[:, :o_ref.shape[-1]] * inv_l).astype(o_ref.dtype)


# ---------------------------------------------------------------------------
# Wrapper
# ---------------------------------------------------------------------------
def self_attention_v1(x, w_query, w_key, w_value, *, mxu_dtype=jnp.bfloat16):
    """x: (S, d_in); weights: (d_in, d_out)  ->  (S, d_out)."""
    S, d_in = x.shape
    d_out = w_query.shape[1]
    out_dtype = x.dtype

    # Lane-dense padded feature dims (multiples of 128).
    d_in_p = _round_up(d_in, 128)
    d_p = _round_up(d_out, 128)
    # The denominator "ones" lane lives in V's zero padding; if d_out is
    # already lane-full, give V one extra 128-lane group.
    if d_out < d_p:
        d_v_p, ones_col = d_p, d_out
    else:
        d_v_p, ones_col = d_p + 128, d_p

    # Tiling: big q tiles amortize per-step overhead / output writeback;
    # bounded k tiles keep the (TQ, TK) f32 score temporaries in check.
    S_128 = _round_up(S, 128)
    block_q = min(512, S_128)
    if S_128 // block_q < 2 and block_q > 128:
        # Keep >=2 q blocks so the "parallel" axis can be sharded across the
        # 2 TensorCores of a v7x chip (harmless on single-TC v5e/v6e).
        block_q = max(128, _round_up(block_q // 2, 128))
    block_k = 256 if block_q % 256 == 0 else 128
    S_p = _round_up(S, block_q)
    n_q, n_k = S_p // block_q, S_p // block_k

    # Fits under every generation's physical VMEM (v7x: 64 MiB/TC) with large
    # headroom for these tiles; raise toward ~96 MiB on v5e/v6e (128 MiB) only
    # if block_q / feature dims grow much larger.
    vmem_limit = 48 * 1024 * 1024

    scale = 1.0 / (float(d_out) ** 0.5)

    # Padded input and fused, pre-scaled weights in the MXU dtype.
    x_p = jnp.zeros((S_p, d_in_p), x.dtype).at[:S, :d_in].set(x)
    w_fused = jnp.zeros((d_in_p, 2 * d_p + d_v_p), jnp.float32)
    w_fused = w_fused.at[:d_in, :d_out].set(w_query.astype(jnp.float32) * scale)
    w_fused = w_fused.at[:d_in, d_p:d_p + d_out].set(w_key.astype(jnp.float32))
    w_fused = w_fused.at[:d_in, 2 * d_p:2 * d_p + d_out].set(
        w_value.astype(jnp.float32))
    w_fused = w_fused.astype(mxu_dtype)

    # Key-padding additive bias (0 for valid keys, -inf for padded keys).
    apply_mask = S_p > S
    key_ids = jnp.arange(S_p)
    bias = jnp.where(key_ids < S, 0.0, -jnp.inf).astype(jnp.float32).reshape(1, S_p)

    mxu_itemsize = jnp.dtype(mxu_dtype).itemsize
    out_itemsize = jnp.dtype(out_dtype).itemsize

    # ---- Stage 1: projection --------------------------------------------
    proj_cost = pl.CostEstimate(
        flops=2 * S_p * d_in_p * (2 * d_p + d_v_p),
        transcendentals=0,
        bytes_accessed=(x_p.size * x_p.dtype.itemsize
                        + w_fused.size * mxu_itemsize
                        + S_p * (2 * d_p + d_v_p) * mxu_itemsize),
    )
    q_p, k_p, v_p = pl.pallas_call(
        functools.partial(_qkv_proj_kernel, ones_col=ones_col),
        out_shape=(
            jax.ShapeDtypeStruct((S_p, d_p), mxu_dtype),
            jax.ShapeDtypeStruct((S_p, d_p), mxu_dtype),
            jax.ShapeDtypeStruct((S_p, d_v_p), mxu_dtype),
        ),
        grid_spec=pltpu.PrefetchScalarGridSpec(
            num_scalar_prefetch=0,
            grid=(n_q,),
            in_specs=[
                pl.BlockSpec((block_q, d_in_p), lambda i: (i, 0)),
                # Constant-index fused weight (stays resident across steps).
                # On VMEM-tight v7x parts, pipeline_mode=pl.Buffered(1) would
                # additionally drop its dead second buffer.
                pl.BlockSpec((d_in_p, 2 * d_p + d_v_p), lambda i: (0, 0)),
            ],
            out_specs=[
                pl.BlockSpec((block_q, d_p), lambda i: (i, 0)),
                pl.BlockSpec((block_q, d_p), lambda i: (i, 0)),
                pl.BlockSpec((block_q, d_v_p), lambda i: (i, 0)),
            ],
        ),
        compiler_params=pltpu.CompilerParams(
            dimension_semantics=("parallel",),
            vmem_limit_bytes=vmem_limit,
        ),
        cost_estimate=proj_cost,
    )(x_p, w_fused)

    # ---- Stage 2: flash attention ----------------------------------------
    flash_cost = pl.CostEstimate(
        flops=2 * S_p * S_p * (d_p + d_v_p),
        transcendentals=S_p * S_p + n_k * S_p,
        bytes_accessed=(S_p * d_p * mxu_itemsize                      # Q (once)
                        + n_q * S_p * (d_p + d_v_p) * mxu_itemsize    # K, V per q block
                        + n_q * S_p * 4                               # bias re-reads
                        + S_p * d_p * out_itemsize),                  # output
    )
    out_p = pl.pallas_call(
        functools.partial(_flash_attn_kernel, ones_col=ones_col,
                          apply_mask=apply_mask),
        out_shape=jax.ShapeDtypeStruct((S_p, d_p), out_dtype),
        grid_spec=pltpu.PrefetchScalarGridSpec(
            num_scalar_prefetch=0,
            grid=(n_q, n_k),
            in_specs=[
                pl.BlockSpec((1, block_k), lambda i, k: (0, k)),       # key bias
                pl.BlockSpec((block_q, d_p), lambda i, k: (i, 0)),     # Q (resident over kv)
                pl.BlockSpec((block_k, d_p), lambda i, k: (k, 0)),     # K
                pl.BlockSpec((block_k, d_v_p), lambda i, k: (k, 0)),   # V (+ ones lane)
            ],
            out_specs=pl.BlockSpec((block_q, d_p), lambda i, k: (i, 0)),
            scratch_shapes=[
                pltpu.VMEM((block_q, 1), jnp.float32),       # running max
                pltpu.VMEM((block_q, d_v_p), jnp.float32),   # acc (+ denominator lane)
            ],
        ),
        compiler_params=pltpu.CompilerParams(
            dimension_semantics=("parallel", "arbitrary"),
            vmem_limit_bytes=vmem_limit,
        ),
        cost_estimate=flash_cost,
    )(bias, q_p, k_p, v_p)

    return out_p[:S, :d_out]


def self_attention_v1_ref(x, w_query, w_key, w_value):
    """Pure-JAX f32 reference mirroring the PyTorch forward."""
    q = x @ w_query
    k = x @ w_key
    v = x @ w_value
    scores = q @ k.T
    weights = jax.nn.softmax(scores / (k.shape[-1] ** 0.5), axis=-1)
    return weights @ v


if __name__ == "__main__":
    # --- test 1: exact shapes implied by the module (S=6, d_in=3, d_out=2)
    inputs_embed = jnp.array(
        [[0.43, 0.15, 0.89],
         [0.55, 0.87, 0.66],
         [0.57, 0.85, 0.64],
         [0.22, 0.58, 0.33],
         [0.77, 0.25, 0.10],
         [0.05, 0.80, 0.55]], dtype=jnp.float32)
    d_in, d_out = inputs_embed.shape[1], 2

    key = jax.random.PRNGKey(0)
    kq, kk, kv = jax.random.split(key, 3)
    # nn.Parameter(torch.rand(d_in, d_out)) -> uniform [0, 1)
    w_query = jax.random.uniform(kq, (d_in, d_out), dtype=jnp.float32)
    w_key = jax.random.uniform(kk, (d_in, d_out), dtype=jnp.float32)
    w_value = jax.random.uniform(kv, (d_in, d_out), dtype=jnp.float32)

    ref = self_attention_v1_ref(inputs_embed, w_query, w_key, w_value)

    # 1a: f32 MXU path — tight check of the kernel logic.
    out_f32 = jax.block_until_ready(
        self_attention_v1(inputs_embed, w_query, w_key, w_value,
                          mxu_dtype=jnp.float32))
    assert out_f32.shape == (inputs_embed.shape[0], d_out)
    assert jnp.allclose(out_f32, ref, atol=1e-4, rtol=1e-4), "mismatch (f32 path)"

    # 1b: default bf16 MXU path — looser tolerance for bf16 operand rounding.
    out_bf16 = jax.block_until_ready(
        self_attention_v1(inputs_embed, w_query, w_key, w_value))
    assert out_bf16.shape == (inputs_embed.shape[0], d_out)
    assert jnp.allclose(out_bf16, ref, atol=5e-2, rtol=5e-2), "mismatch (bf16 path)"

    # --- test 2: multi-block grid (2x2) + partially padded trailing kv block
    S2, di2, do2 = 320, 16, 8
    k2 = jax.random.PRNGKey(0)
    kx2, kq2, kk2, kv2 = jax.random.split(k2, 4)
    x2 = jax.random.uniform(kx2, (S2, di2), minval=-0.5, maxval=0.5)
    wq2 = jax.random.uniform(kq2, (di2, do2), minval=-0.5, maxval=0.5)
    wk2 = jax.random.uniform(kk2, (di2, do2), minval=-0.5, maxval=0.5)
    wv2 = jax.random.uniform(kv2, (di2, do2), minval=-0.5, maxval=0.5)

    out2 = jax.block_until_ready(self_attention_v1(x2, wq2, wk2, wv2))
    ref2 = self_attention_v1_ref(x2, wq2, wk2, wv2)
    assert out2.shape == (S2, do2)
    assert jnp.allclose(out2, ref2, atol=1e-2, rtol=1e-2), "mismatch (tiled)"

    # --- test 3: block_q=512 path with a fully padded trailing kv block
    S3, di3, do3 = 1030, 24, 16
    k3 = jax.random.PRNGKey(0)
    kx3, kq3, kk3, kv3 = jax.random.split(k3, 4)
    x3 = jax.random.uniform(kx3, (S3, di3), minval=-0.5, maxval=0.5)
    wq3 = jax.random.uniform(kq3, (di3, do3), minval=-0.5, maxval=0.5)
    wk3 = jax.random.uniform(kk3, (di3, do3), minval=-0.5, maxval=0.5)
    wv3 = jax.random.uniform(kv3, (di3, do3), minval=-0.5, maxval=0.5)

    out3 = jax.block_until_ready(self_attention_v1(x3, wq3, wk3, wv3))
    ref3 = self_attention_v1_ref(x3, wq3, wk3, wv3)
    assert out3.shape == (S3, do3)
    assert jnp.allclose(out3, ref3, atol=1e-2, rtol=1e-2), "mismatch (long)"

    print("KERNEL_OK")
</pallas_src>

<mosaic_0001>
module attributes {stable_mosaic.version = 11 : i64} {
  func.func @_qkv_proj_kernel(%arg0: i32, %arg1: memref<128x128xf32, #tpu.memory_space<vmem>>, %arg2: memref<128x384xf32, #tpu.memory_space<vmem>>, %arg3: memref<128x128xf32, #tpu.memory_space<vmem>>, %arg4: memref<128x128xf32, #tpu.memory_space<vmem>>, %arg5: memref<128x128xf32, #tpu.memory_space<vmem>>) attributes {dimension_semantics = [#tpu.dimension_semantics<parallel>], iteration_bounds = array<i64: 1>, scalar_prefetch = 0 : i64, scratch_operands = 0 : i64, tpu.core_type = #tpu.core_type<tc>, window_params = [{transform_indices = @transform_0, window_bounds = array<i64: 128, 128>}, {pipeline_mode = #tpu.pipeline_mode<synchronous>, transform_indices = @transform_1, window_bounds = array<i64: 128, 384>}, {transform_indices = @transform_2, window_bounds = array<i64: 128, 128>}, {transform_indices = @transform_3, window_bounds = array<i64: 128, 128>}, {transform_indices = @transform_4, window_bounds = array<i64: 128, 128>}]} {
    %c0 = arith.constant 0 : index
    %c0_0 = arith.constant 0 : index
    %0 = vector.load %arg1[%c0, %c0_0] : memref<128x128xf32, #tpu.memory_space<vmem>>, vector<128x128xf32>
    %c0_1 = arith.constant 0 : index
    %c0_2 = arith.constant 0 : index
    %1 = vector.load %arg2[%c0_1, %c0_2] : memref<128x384xf32, #tpu.memory_space<vmem>>, vector<128x384xf32>
    %cst = arith.constant dense<0.000000e+00> : vector<128x384xf32>
    %2 = tpu.matmul %0, %1, %cst {dimension_numbers = #tpu.dot_dimension_numbers<[1], [0], [0], [1], [0, 0, 1, 1], [], []>} : vector<128x128xf32>, vector<128x384xf32>, vector<128x384xf32> -> vector<128x384xf32>
    %3 = vector.extract_strided_slice %2 {offsets = [0, 0], sizes = [128, 128], strides = [1, 1]} : vector<128x384xf32> to vector<128x128xf32>
    %c0_3 = arith.constant 0 : index
    %c0_4 = arith.constant 0 : index
    %4 = vector.load %arg3[%c0_3, %c0_4] : memref<128x128xf32, #tpu.memory_space<vmem>>, vector<128x128xf32>
    tpu.vector_store %arg3[%c0_3, %c0_4], %3 {strides = array<i32>} : memref<128x128xf32, #tpu.memory_space<vmem>>, vector<128x128xf32>,
    %5 = vector.extract_strided_slice %2 {offsets = [0, 128], sizes = [128, 128], strides = [1, 1]} : vector<128x384xf32> to vector<128x128xf32>
    %c0_5 = arith.constant 0 : index
    %c0_6 = arith.constant 0 : index
    %6 = vector.load %arg4[%c0_5, %c0_6] : memref<128x128xf32, #tpu.memory_space<vmem>>, vector<128x128xf32>
    tpu.vector_store %arg4[%c0_5, %c0_6], %5 {strides = array<i32>} : memref<128x128xf32, #tpu.memory_space<vmem>>, vector<128x128xf32>,
    %7 = vector.extract_strided_slice %2 {offsets = [0, 256], sizes = [128, 128], strides = [1, 1]} : vector<128x384xf32> to vector<128x128xf32>
    %8 = tpu.iota {dimensions = array<i32: 1>} : vector<128x128xi32>
    %c2_i32 = arith.constant 2 : i32
    %9 = vector.broadcast %c2_i32 : i32 to vector<128x128xi32>
    %10 = arith.cmpi eq, %8, %9 : vector<128x128xi32>
    %cst_7 = arith.constant 1.000000e+00 : f32
    %11 = vector.broadcast %cst_7 : f32 to vector<128x128xf32>
    %12 = arith.select %10, %11, %7 : vector<128x128xi1>, vector<128x128xf32>
    %c0_8 = arith.constant 0 : index
    %c0_9 = arith.constant 0 : index
    %13 = vector.load %arg5[%c0_8, %c0_9] : memref<128x128xf32, #tpu.memory_space<vmem>>, vector<128x128xf32>
    tpu.vector_store %arg5[%c0_8, %c0_9], %12 {strides = array<i32>} : memref<128x128xf32, #tpu.memory_space<vmem>>, vector<128x128xf32>,
    return
  }
  func.func @transform_0(%arg0: i32) -> (i32, i32) {
    %c0_i32 = arith.constant 0 : i32
    %c0_i32_0 = arith.constant 0 : i32
    return %arg0, %c0_i32 : i32, i32
  }
  func.func @transform_1(%arg0: i32) -> (i32, i32) {
    %c0_i32 = arith.constant 0 : i32
    %c0_i32_0 = arith.constant 0 : i32
    %c0_i32_1 = arith.constant 0 : i32
    return %c0_i32, %c0_i32_0 : i32, i32
  }
  func.func @transform_2(%arg0: i32) -> (i32, i32) {
    %c0_i32 = arith.constant 0 : i32
    %c0_i32_0 = arith.constant 0 : i32
    return %arg0, %c0_i32 : i32, i32
  }
  func.func @transform_3(%arg0: i32) -> (i32, i32) {
    %c0_i32 = arith.constant 0 : i32
    %c0_i32_0 = arith.constant 0 : i32
    return %arg0, %c0_i32 : i32, i32
  }
  func.func @transform_4(%arg0: i32) -> (i32, i32) {
    %c0_i32 = arith.constant 0 : i32
    %c0_i32_0 = arith.constant 0 : i32
    return %arg0, %c0_i32 : i32, i32
  }
}

</mosaic_0001>

<bundles_post_ra>
// kernel: tpu_custom_call.1
= control target key start
LH: loop header
LB: loop body
LE: loop exit
PB: predicated region body
PF: predicated region fallthrough
CT: control target
= control target key end

     0   :  { %10 = vsyncpa [#allocation3], 0  ;;  %s986_s0 = inlined_call_operand.hbm [shape: f32[128,128], index: 0, kind: input, shape index: {}]   ;;  %s987_s1 = inlined_call_operand.hbm [shape: f32[128,384], index: 1, kind: input, shape index: {}]   ;;  %s988_s2 = inlined_call_operand.hbm [shape: f32[128,128], index: 2, kind: output, shape index: {0}]   ;;  %s989_s3 = inlined_call_operand.hbm [shape: f32[128,128], index: 3, kind: output, shape index: {1}]   ;;  %s990_s4 = inlined_call_operand.hbm [shape: f32[128,128], index: 4, kind: output, shape index: {2}]  }
   0x1   :  { %11 = vsyncpa [#allocation6], 0 }
   0x2   :  { %12 = vsyncpa [#allocation4], 0 }
   0x3   :  { %13 = vsyncpa [#allocation9], 0  ;;  %s810_s15 = smov [#allocation2]   ;;  %s692_s19 = scalar_lea.hbm %s986_s0, 2048 }
   0x4   :  { %s19_s16 = sshll.u32 %s810_s15, 4  ;;  %p693_p0 = scmp.ne.s32.totalorder %s986_s0, %s692_s19  ;;  %s20_s16 = int_to_ptr.vmem [resolvable:$true] %s19_s16 }
   0x5   :  { %p696_p1 = scmp.lt.u32.totalorder %s692_s19, %s986_s0 }
   0x7   :  { %p698_p2 = pnand %p696_p1, %p693_p0 }
   0x9   :  { %701 = shalt.err (!%p698_p2)
}
   0xa   :  { %s702_s24 = scalar_lea.vmem %s20_s16, 2048  ;;  %p707_p4 = scmp.lt.s32.totalorder %s20_s16, %s20_s16 }
   0xb   :  { %p703_p3 = scmp.ne.s32.totalorder %s20_s16, %s702_s24  ;;  %p708_p5 = scmp.lt.s32.totalorder %s702_s24, %s702_s24 }
   0xd   :  { %p709_p6 = por %p708_p5, %p707_p4 }
   0xf   :  { %p710_p7 = pnand %p709_p6, %p703_p3 }
  0x11   :  { %713 = shalt.err (!%p710_p7)
}
  0x12   :  { %s811_s25 = smov 128   ;;  %s812_s26 = smov 8  }
  0x13   :  { %25 = dma.hbm_to_vmem [thread:$0]  %s986_s0, 2048, %s20_s16, [#allocation3], %s811_s25, %s811_s25, %s812_s26  }
  0x14   :  { %s813_s29 = smov [#allocation5]   ;;  %s714_s7 = scalar_lea.hbm %s987_s1, 6144 }
  0x15   :  { %s31_s30 = sshll.u32 %s813_s29, 4  ;;  %p715_p8 = scmp.ne.s32.totalorder %s987_s1, %s714_s7  ;;  %s32_s30 = int_to_ptr.vmem [resolvable:$true] %s31_s30 }
  0x16   :  { %p718_p9 = scmp.lt.u32.totalorder %s714_s7, %s987_s1 }
  0x18   :  { %p720_p10 = pnand %p718_p9, %p715_p8 }
  0x1a   :  { %723 = shalt.err (!%p720_p10)
}
  0x1b   :  { %s724_s12 = scalar_lea.vmem %s32_s30, 6144  ;;  %p729_p12 = scmp.lt.s32.totalorder %s32_s30, %s32_s30 }
  0x1c   :  { %p725_p11 = scmp.ne.s32.totalorder %s32_s30, %s724_s12  ;;  %p730_p13 = scmp.lt.s32.totalorder %s724_s12, %s724_s12 }
  0x1e   :  { %p731_p0 = por %p730_p13, %p729_p12 }
  0x20   :  { %p732_p1 = pnand %p731_p0, %p725_p11 }
  0x22   :  { %735 = shalt.err (!%p732_p1)
}
  0x23   :  { %s814_s0 = smov 384   ;;  %s815_s13 = smov 24  }
  0x24   :  { %37 = dma.hbm_to_vmem [thread:$0]  %s987_s1, 6144, %s32_s30, [#allocation6], %s814_s0, %s814_s0, %s815_s13  }
  0x25   :  { %802 = dma.done.wait [#allocation3], 2048  }
  0x26   :  { %803 = vsyncadd [#allocation3], 4294965248 }
  0x27   :  { %804 = dma.done.wait [#allocation6], 6144  }
  0x28   :  { %805 = vsyncadd [#allocation6], 4294961152  ;;  %v816_v0 = vmov 0.0   ;;  %v61_v1 = vld [vmem:[#allocation5 + $0x8] sm:$0xff]  ;;  %v64_v2 = vld [vmem:[#allocation5 + $0x20] sm:$0xff]  ;;  %s817_s1 = smov [#allocation7]  }
  0x29   :  { %172 = vmatprep.mubr.f32.mxu0 %v816_v0  ;;  %v60_v3 = vld [vmem:[#allocation5] sm:$0xff]  ;;  %v618_v4 = vpack.c.bf16 %v64_v2, %v61_v1  ;;  %v63_v5 = vld [vmem:[#allocation5 + $0x18] sm:$0xff]  ;;  %v70_v7 = vld [vmem:[#allocation5 + $0x50] sm:$0xff]  ;;  %s486_s16 = sshll.u32 %s817_s1, 4  ;;  %s818_s17 = smov [#allocation8]   ;;  %s487_s16 = int_to_ptr.vmem [resolvable:$true] %s486_s16 }
  0x2a   :  { %v67_v6 = vld [vmem:[#allocation5 + $0x38] sm:$0xff]  ;;  %v620_v8 = vpack.c.bf16 %v63_v5, %v60_v3  ;;  %v66_v10 = vld [vmem:[#allocation5 + $0x30] sm:$0xff]  ;;  %v69_v11 = vld [vmem:[#allocation5 + $0x48] sm:$0xff]  ;;  %s498_s18 = sshll.u32 %s818_s17, 4  ;;  %s819_s19 = smov [#allocation10]   ;;  %s927_s18 = int_to_ptr.vmem [resolvable:$true] %s498_s18 }
  0x2b   :  { %v622_v9 = vpack.c.bf16 %v70_v7, %v67_v6  ;;  %v73_v12 = vld [vmem:[#allocation5 + $0x68] sm:$0xff]  ;;  %619 = vmatprep.subr.bf16.mxu0 %v618_v4  ;;  %v76_v13 = vld [vmem:[#allocation5 + $0x80] sm:$0xff]  ;;  %v624_v14 = vpack.c.bf16 %v69_v11, %v66_v10  ;;  %v75_v17 = vld [vmem:[#allocation5 + $0x78] sm:$0xff]  ;;  %s510_s20 = sshll.u32 %s819_s19, 4  ;;  %s736_s21 = scalar_lea.vmem %s487_s16, 2048  ;;  %s929_s20 = int_to_ptr.vmem [resolvable:$true] %s510_s20 }
  0x2c   :  { %621 = vmatpush1.bf16.msra.mxu0 %v620_v8  ;;  %v626_v15 = vpack.c.bf16 %v76_v13, %v73_v12  ;;  %v72_v16 = vld [vmem:[#allocation5 + $0x60] sm:$0xff]  ;;  %v79_v18 = vld [vmem:[#allocation5 + $0x98] sm:$0xff]  ;;  %v82_v19 = vld [vmem:[#allocation5 + $0xb0] sm:$0xff]  ;;  %p737_p2 = scmp.ne.s32.totalorder %s487_s16, %s736_s21  ;;  %p741_p3 = scmp.lt.s32.totalorder %s487_s16, %s487_s16 }
  0x2d   :  { %623 = vmatprep.subr.bf16.mxu0 %v622_v9  ;;  %v628_v20 = vpack.c.bf16 %v75_v17, %v72_v16  ;;  %v630_v21 = vpack.c.bf16 %v82_v19, %v79_v18  ;;  %v78_v22 = vld [vmem:[#allocation5 + $0x90] sm:$0xff]  ;;  %v81_v23 = vld [vmem:[#allocation5 + $0xa8] sm:$0xff]  ;;  %v88_v25 = vld [vmem:[#allocation5 + $0xe0] sm:$0xff]  ;;  %p742_p4 = scmp.lt.s32.totalorder %s736_s21, %s736_s21 }
  0x2e   :  { %v85_v24 = vld [vmem:[#allocation5 + $0xc8] sm:$0xff]  ;;  %v62_v26 = vld [vmem:[#allocation5 + $0x10] sm:$0xff]  ;;  %v873_v28 = vld [vmem:[#allocation2] sm:$0xff]  ;;  %v632_v30 = vpack.c.bf16 %v81_v23, %v78_v22 }
  0x2f   :  { %v65_v27 = vld [vmem:[#allocation5 + $0x28] sm:$0xff]  ;;  %v68_v29 = vld [vmem:[#allocation5 + $0x40] sm:$0xff]  ;;  %v71_v33 = vld [vmem:[#allocation5 + $0x58] sm:$0xff]  ;;  %594 = vmatprep.mubr.f32.mxu1 %v873_v28  ;;  %v634_v34 = vpack.c.bf16 %v88_v25, %v85_v24  ;;  %p743_p5 = por %p742_p4, %p741_p3 }
  0x30   :  { %625 = vmatpush1.bf16.msra.mxu0 %v624_v14  ;;  %v84_v31 = vld [vmem:[#allocation5 + $0xc0] sm:$0xff]  ;;  %v650_v32 = vpack.c.bf16 %v65_v27, %v62_v26  ;;  %v87_v35 = vld [vmem:[#allocation5 + $0xd8] sm:$0xff]  ;;  %v654_v36 = vpack.c.bf16 %v71_v33, %v68_v29  ;;  %v74_v37 = vld [vmem:[#allocation5 + $0x70] sm:$0xff] }
  0x31   :  { %627 = vmatprep.subr.bf16.mxu0 %v626_v15  ;;  %v77_v38 = vld [vmem:[#allocation5 + $0x88] sm:$0xff]  ;;  %v91_v39 = vld [vmem:[#allocation5 + $0xf8] sm:$0xff]  ;;  %v94_v40 = vld [vmem:[#allocation5 + $0x110] sm:$0xff]  ;;  %v636_v41 = vpack.c.bf16 %v87_v35, %v84_v31  ;;  %p744_p6 = pnand %p743_p5, %p737_p2 }
  0x32   :  { %651 = vmatprep.subr.bf16.mxu1 %v650_v32  ;;  %v90_v42 = vld [vmem:[#allocation5 + $0xf0] sm:$0xff]  ;;  %v658_v43 = vpack.c.bf16 %v77_v38, %v74_v37  ;;  %v638_v44 = vpack.c.bf16 %v94_v40, %v91_v39  ;;  %v93_v45 = vld [vmem:[#allocation5 + $0x108] sm:$0xff]  ;;  %v80_v46 = vld [vmem:[#allocation5 + $0xa0] sm:$0xff] }
  0x33   :  { %653 = vmatpush3.bf16.msra.mxu1 %v650_v32  ;;  %v83_v47 = vld [vmem:[#allocation5 + $0xb8] sm:$0xff]  ;;  %v97_v48 = vld [vmem:[#allocation5 + $0x128] sm:$0xff]  ;;  %v100_v49 = vld [vmem:[#allocation5 + $0x140] sm:$0xff]  ;;  %v640_v50 = vpack.c.bf16 %v93_v45, %v90_v42 }
  0x34   :  { %629 = vmatpush1.bf16.msra.mxu0 %v628_v20  ;;  %655 = vmatprep.subr.bf16.mxu1 %v654_v36  ;;  %v96_v51 = vld [vmem:[#allocation5 + $0x120] sm:$0xff]  ;;  %v662_v52 = vpack.c.bf16 %v83_v47, %v80_v46  ;;  %v642_v53 = vpack.c.bf16 %v100_v49, %v97_v48  ;;  %v99_v54 = vld [vmem:[#allocation5 + $0x138] sm:$0xff]  ;;  %v86_v55 = vld [vmem:[#allocation5 + $0xd0] sm:$0xff] }
  0x35   :  { %631 = vmatprep.subr.bf16.mxu0 %v630_v21  ;;  %v89_v56 = vld [vmem:[#allocation5 + $0xe8] sm:$0xff]  ;;  %v103_v57 = vld [vmem:[#allocation5 + $0x158] sm:$0xff]  ;;  %v106_v58 = vld [vmem:[#allocation5 + $0x170] sm:$0xff]  ;;  %v644_v59 = vpack.c.bf16 %v99_v54, %v96_v51 }
  0x36   :  { %v102_v60 = vld [vmem:[#allocation5 + $0x150] sm:$0xff]  ;;  %v666_v61 = vpack.c.bf16 %v89_v56, %v86_v55  ;;  %v646_v62 = vpack.c.bf16 %v106_v58, %v103_v57  ;;  %v105_v63 = vld [vmem:[#allocation5 + $0x168] sm:$0xff]  ;;  %v92_v1 = vld [vmem:[#allocation5 + $0x100] sm:$0xff] }
  0x37   :  { %657 = vmatpush3.bf16.msra.mxu1 %v654_v36  ;;  %v95_v2 = vld [vmem:[#allocation5 + $0x118] sm:$0xff]  ;;  %v648_v3 = vpack.c.bf16 %v105_v63, %v102_v60  ;;  %v98_v5 = vld [vmem:[#allocation5 + $0x130] sm:$0xff]  ;;  %v101_v6 = vld [vmem:[#allocation5 + $0x148] sm:$0xff] }
  0x38   :  { %633 = vmatpush1.bf16.msra.mxu0 %v632_v30  ;;  %659 = vmatprep.subr.bf16.mxu1 %v658_v43  ;;  %v670_v4 = vpack.c.bf16 %v95_v2, %v92_v1  ;;  %v674_v7 = vpack.c.bf16 %v101_v6, %v98_v5  ;;  %v104_v8 = vld [vmem:[#allocation5 + $0x160] sm:$0xff]  ;;  %v107_v9 = vld [vmem:[#allocation5 + $0x178] sm:$0xff]  ;;  %v45_v10 = vld [vmem:[#allocation2 + $0x8] sm:$0xff] }
  0x39   :  { %635 = vmatprep.subr.bf16.mxu0 %v634_v34  ;;  %v678_v11 = vpack.c.bf16 %v107_v9, %v104_v8  ;;  %v46_v12 = vld [vmem:[#allocation2 + $0x10] sm:$0xff]  ;;  %v47_v13 = vld [vmem:[#allocation2 + $0x18] sm:$0xff]  ;;  %v48_v14 = vld [vmem:[#allocation2 + $0x20] sm:$0xff] }
  0x3a   :  { %v49_v15 = vld [vmem:[#allocation2 + $0x28] sm:$0xff]  ;;  %v50_v16 = vld [vmem:[#allocation2 + $0x30] sm:$0xff]  ;;  %v51_v17 = vld [vmem:[#allocation2 + $0x38] sm:$0xff] }
  0x3b   :  { %661 = vmatpush3.bf16.msra.mxu1 %v658_v43  ;;  %v52_v18 = vld [vmem:[#allocation2 + $0x40] sm:$0xff]  ;;  %v53_v19 = vld [vmem:[#allocation2 + $0x48] sm:$0xff]  ;;  %v54_v20 = vld [vmem:[#allocation2 + $0x50] sm:$0xff] }
  0x3c   :  { %637 = vmatpush1.bf16.msra.mxu0 %v636_v41  ;;  %663 = vmatprep.subr.bf16.mxu1 %v662_v52  ;;  %v55_v21 = vld [vmem:[#allocation2 + $0x58] sm:$0xff]  ;;  %v56_v22 = vld [vmem:[#allocation2 + $0x60] sm:$0xff]  ;;  %v57_v23 = vld [vmem:[#allocation2 + $0x68] sm:$0xff] }
  0x3d   :  { %639 = vmatprep.subr.bf16.mxu0 %v638_v44  ;;  %v58_v24 = vld [vmem:[#allocation2 + $0x70] sm:$0xff]  ;;  %v59_v25 = vld [vmem:[#allocation2 + $0x78] sm:$0xff] }
  0x3f   :  { %665 = vmatpush3.bf16.msra.mxu1 %v662_v52 }
  0x40   :  { %641 = vmatpush1.bf16.msra.mxu0 %v640_v50  ;;  %667 = vmatprep.subr.bf16.mxu1 %v666_v61 }
  0x41   :  { %643 = vmatprep.subr.bf16.mxu0 %v642_v53 }
  0x43   :  { %669 = vmatpush3.bf16.msra.mxu1 %v666_v61 }
  0x44   :  { %645 = vmatpush1.bf16.msra.mxu0 %v644_v59  ;;  %671 = vmatprep.subr.bf16.mxu1 %v670_v4 }
  0x45   :  { %647 = vmatprep.subr.bf16.mxu0 %v646_v62 }
  0x47   :  { %673 = vmatpush3.bf16.msra.mxu1 %v670_v4 }
  0x48   :  { %649 = vmatpush1.bf16.msra.mxu0 %v648_v3  ;;  %675 = vmatprep.subr.bf16.mxu1 %v674_v7 }
  0x4b   :  { %173 = vmatmul.mubr.f32.vlgmr.msra.gmra.mrb[0].mxu0 %v873_v28  ;;  %677 = vmatpush3.bf16.msra.mxu1 %v674_v7  ;;  %v446_v28 = vlaneseq }
  0x4c   :  { %178 = vmatprep.mubr.f32.mxu0 %v816_v0  ;;  %679 = vmatprep.subr.bf16.mxu1 %v678_v11 }
  0x4d   :  { %v892_v31 = vand.u32 127, %v446_v28 }
  0x4f   :  { %179 = vmatmul.mubr.f32.gmra.mrb[2].mxu0 %v45_v10  ;;  %681 = vmatpush3.bf16.msra.mxu1 %v678_v11  ;;  %vm448_vm0 = vcmp.eq.s32.totalorder %v892_v31, 2 }
  0x50   :  { %184 = vmatprep.mubr.f32.mxu0 %v816_v0 }
  0x52   :  { %595 = vmatmul.mubr.f32.vlgmr.msra.gmra.mrb[0].mxu1 %v45_v10 }
  0x53   :  { %185 = vmatmul.mubr.f32.gmra.mrb[4].mxu0 %v46_v12  ;;  %597 = vmatprep.mubr.f32.mxu1 %v46_v12 }
  0x54   :  { %190 = vmatprep.mubr.f32.mxu0 %v816_v0 }
  0x56   :  { %598 = vmatmul.mubr.f32.gmra.mrb[2].mxu1 %v47_v13 }
  0x57   :  { %191 = vmatmul.mubr.f32.gmra.mrb[6].mxu0 %v47_v13  ;;  %600 = vmatprep.mubr.f32.mxu1 %v48_v14 }
  0x58   :  { %196 = vmatprep.mubr.f32.mxu0 %v816_v0 }
  0x5a   :  { %601 = vmatmul.mubr.f32.gmra.mrb[4].mxu1 %v49_v15 }
  0x5b   :  { %197 = vmatmul.mubr.f32.gmra.mrb[8].mxu0 %v48_v14  ;;  %603 = vmatprep.mubr.f32.mxu1 %v50_v16 }
  0x5c   :  { %202 = vmatprep.mubr.f32.mxu0 %v816_v0 }
  0x5e   :  { %604 = vmatmul.mubr.f32.gmra.mrb[6].mxu1 %v51_v17 }
  0x5f   :  { %203 = vmatmul.mubr.f32.gmra.mrb[10].mxu0 %v49_v15  ;;  %606 = vmatprep.mubr.f32.mxu1 %v52_v18 }
  0x60   :  { %208 = vmatprep.mubr.f32.mxu0 %v816_v0 }
  0x62   :  { %607 = vmatmul.mubr.f32.gmra.mrb[8].mxu1 %v53_v19 }
  0x63   :  { %209 = vmatmul.mubr.f32.gmra.mrb[12].mxu0 %v50_v16  ;;  %609 = vmatprep.mubr.f32.mxu1 %v54_v20 }
  0x64   :  { %214 = vmatprep.mubr.f32.mxu0 %v816_v0 }
  0x66   :  { %610 = vmatmul.mubr.f32.gmra.mrb[10].mxu1 %v55_v21 }
  0x67   :  { %215 = vmatmul.mubr.f32.gmra.mrb[14].mxu0 %v51_v17  ;;  %612 = vmatprep.mubr.f32.mxu1 %v56_v22 }
  0x68   :  { %220 = vmatprep.mubr.f32.mxu0 %v816_v0 }
  0x6a   :  { %613 = vmatmul.mubr.f32.gmra.mrb[12].mxu1 %v57_v23 }
  0x6b   :  { %221 = vmatmul.mubr.f32.gmra.mrb[16].mxu0 %v52_v18  ;;  %615 = vmatprep.mubr.f32.mxu1 %v58_v24 }
  0x6c   :  { %226 = vmatprep.mubr.f32.mxu0 %v816_v0 }
  0x6e   :  { %616 = vmatmul.mubr.f32.gmra.mrb[14].mxu1 %v59_v25 }
  0x6f   :  { %227 = vmatmul.mubr.f32.gmra.mrb[18].mxu0 %v53_v19 }
  0x70   :  { %232 = vmatprep.mubr.f32.mxu0 %v816_v0 }
  0x73   :  { %233 = vmatmul.mubr.f32.gmra.mrb[20].mxu0 %v54_v20 }
  0x74   :  { %238 = vmatprep.mubr.f32.mxu0 %v816_v0 }
  0x77   :  { %239 = vmatmul.mubr.f32.gmra.mrb[22].mxu0 %v55_v21 }
  0x78   :  { %244 = vmatprep.mubr.f32.mxu0 %v816_v0 }
  0x7b   :  { %245 = vmatmul.mubr.f32.gmra.mrb[24].mxu0 %v56_v22 }
  0x7c   :  { %250 = vmatprep.mubr.f32.mxu0 %v816_v0 }
  0x7f   :  { %251 = vmatmul.mubr.f32.gmra.mrb[26].mxu0 %v57_v23 }
  0x80   :  { %256 = vmatprep.mubr.f32.mxu0 %v816_v0 }
  0x83   :  { %257 = vmatmul.mubr.f32.gmra.mrb[28].mxu0 %v58_v24 }
  0x84   :  { %262 = vmatprep.mubr.f32.mxu0 %v816_v0 }
  0x87   :  { %263 = vmatmul.mubr.f32.gmra.mrb[30].mxu0 %v59_v25 }
 0x11e   :  { %v174_v26 = vpop.f32.mrb[0].mxu0 }
 0x11f   :  { %414 = vst [vmem:[#allocation7] sm:$0xff] %v174_v26  ;;  %v176_v27 = vpop.f32.mrb[1].mxu0 }
 0x120   :  { %430 = vst [vmem:[#allocation8] sm:$0xff] %v176_v27 }
 0x122   :  { %v180_v29 = vpop.f32.mrb[2].mxu0 }
 0x123   :  { %415 = vst [vmem:[#allocation7 + $0x8] sm:$0xff] %v180_v29  ;;  %v182_v30 = vpop.f32.mrb[3].mxu0 }
 0x124   :  { %431 = vst [vmem:[#allocation8 + $0x8] sm:$0xff] %v182_v30 }
 0x125   :  { %v596_v34 = vpop.f32.mrb[0].mxu1 }
 0x126   :  { %v186_v32 = vpop.f32.mrb[4].mxu0  ;;  %v450_v35 = vsel %vm448_vm0, 1.0, %v596_v34  ;;  %v335_v36 = vpop.f32.mrb[1].mxu1 }
 0x127   :  { %416 = vst [vmem:[#allocation7 + $0x10] sm:$0xff] %v186_v32  ;;  %v188_v33 = vpop.f32.mrb[5].mxu0  ;;  %466 = vst [vmem:[#allocation10 + $0x8] sm:$0xff] %v450_v35  ;;  %v449_v38 = vsel %vm448_vm0, 1.0, %v335_v36 }
 0x128   :  { %432 = vst [vmem:[#allocation8 + $0x10] sm:$0xff] %v188_v33  ;;  %465 = vst [vmem:[#allocation10] sm:$0xff] %v449_v38 }
 0x129   :  { %v599_v39 = vpop.f32.mrb[2].mxu1 }
 0x12a   :  { %v192_v0 = vpop.f32.mrb[6].mxu0  ;;  %v452_v41 = vsel %vm448_vm0, 1.0, %v599_v39  ;;  %v345_v42 = vpop.f32.mrb[3].mxu1 }
 0x12b   :  { %417 = vst [vmem:[#allocation7 + $0x18] sm:$0xff] %v192_v0  ;;  %v194_v37 = vpop.f32.mrb[7].mxu0  ;;  %468 = vst [vmem:[#allocation10 + $0x18] sm:$0xff] %v452_v41  ;;  %v451_v44 = vsel %vm448_vm0, 1.0, %v345_v42 }
 0x12c   :  { %433 = vst [vmem:[#allocation8 + $0x18] sm:$0xff] %v194_v37  ;;  %467 = vst [vmem:[#allocation10 + $0x10] sm:$0xff] %v451_v44 }
 0x12d   :  { %v602_v45 = vpop.f32.mrb[4].mxu1 }
 0x12e   :  { %v198_v40 = vpop.f32.mrb[8].mxu0  ;;  %v454_v47 = vsel %vm448_vm0, 1.0, %v602_v45  ;;  %v355_v48 = vpop.f32.mrb[5].mxu1 }
 0x12f   :  { %418 = vst [vmem:[#allocation7 + $0x20] sm:$0xff] %v198_v40  ;;  %v200_v43 = vpop.f32.mrb[9].mxu0  ;;  %470 = vst [vmem:[#allocation10 + $0x28] sm:$0xff] %v454_v47  ;;  %v453_v50 = vsel %vm448_vm0, 1.0, %v355_v48 }
 0x130   :  { %434 = vst [vmem:[#allocation8 + $0x20] sm:$0xff] %v200_v43  ;;  %469 = vst [vmem:[#allocation10 + $0x20] sm:$0xff] %v453_v50 }
 0x131   :  { %v605_v51 = vpop.f32.mrb[6].mxu1 }
 0x132   :  { %v204_v46 = vpop.f32.mrb[10].mxu0  ;;  %v456_v53 = vsel %vm448_vm0, 1.0, %v605_v51  ;;  %v365_v54 = vpop.f32.mrb[7].mxu1 }
 0x133   :  { %419 = vst [vmem:[#allocation7 + $0x28] sm:$0xff] %v204_v46  ;;  %v206_v49 = vpop.f32.mrb[11].mxu0  ;;  %472 = vst [vmem:[#allocation10 + $0x38] sm:$0xff] %v456_v53  ;;  %v455_v56 = vsel %vm448_vm0, 1.0, %v365_v54 }
 0x134   :  { %435 = vst [vmem:[#allocation8 + $0x28] sm:$0xff] %v206_v49  ;;  %471 = vst [vmem:[#allocation10 + $0x30] sm:$0xff] %v455_v56 }
 0x135   :  { %v608_v57 = vpop.f32.mrb[8].mxu1 }
 0x136   :  { %v210_v52 = vpop.f32.mrb[12].mxu0  ;;  %v458_v59 = vsel %vm448_vm0, 1.0, %v608_v57  ;;  %v375_v60 = vpop.f32.mrb[9].mxu1 }
 0x137   :  { %420 = vst [vmem:[#allocation7 + $0x30] sm:$0xff] %v210_v52  ;;  %v212_v55 = vpop.f32.mrb[13].mxu0  ;;  %474 = vst [vmem:[#allocation10 + $0x48] sm:$0xff] %v458_v59  ;;  %v457_v62 = vsel %vm448_vm0, 1.0, %v375_v60 }
 0x138   :  { %436 = vst [vmem:[#allocation8 + $0x30] sm:$0xff] %v212_v55  ;;  %473 = vst [vmem:[#allocation10 + $0x40] sm:$0xff] %v457_v62 }
 0x139   :  { %v611_v63 = vpop.f32.mrb[10].mxu1 }
 0x13a   :  { %v216_v58 = vpop.f32.mrb[14].mxu0  ;;  %v460_v2 = vsel %vm448_vm0, 1.0, %v611_v63  ;;  %v385_v3 = vpop.f32.mrb[11].mxu1 }
 0x13b   :  { %421 = vst [vmem:[#allocation7 + $0x38] sm:$0xff] %v216_v58  ;;  %v218_v61 = vpop.f32.mrb[15].mxu0  ;;  %476 = vst [vmem:[#allocation10 + $0x58] sm:$0xff] %v460_v2  ;;  %v459_v5 = vsel %vm448_vm0, 1.0, %v385_v3 }
 0x13c   :  { %437 = vst [vmem:[#allocation8 + $0x38] sm:$0xff] %v218_v61  ;;  %475 = vst [vmem:[#allocation10 + $0x50] sm:$0xff] %v459_v5 }
 0x13d   :  { %v614_v6 = vpop.f32.mrb[12].mxu1 }
 0x13e   :  { %v222_v1 = vpop.f32.mrb[16].mxu0  ;;  %v462_v8 = vsel %vm448_vm0, 1.0, %v614_v6  ;;  %v395_v9 = vpop.f32.mrb[13].mxu1 }
 0x13f   :  { %422 = vst [vmem:[#allocation7 + $0x40] sm:$0xff] %v222_v1  ;;  %v224_v4 = vpop.f32.mrb[17].mxu0  ;;  %478 = vst [vmem:[#allocation10 + $0x68] sm:$0xff] %v462_v8  ;;  %v461_v11 = vsel %vm448_vm0, 1.0, %v395_v9 }
 0x140   :  { %438 = vst [vmem:[#allocation8 + $0x40] sm:$0xff] %v224_v4  ;;  %477 = vst [vmem:[#allocation10 + $0x60] sm:$0xff] %v461_v11 }
 0x141   :  { %v617_v12 = vpop.f32.mrb[14].mxu1 }
 0x142   :  { %v228_v7 = vpop.f32.mrb[18].mxu0  ;;  %v464_v14 = vsel %vm448_vm0, 1.0, %v617_v12  ;;  %v405_v15 = vpop.f32.mrb[15].mxu1 }
 0x143   :  { %423 = vst [vmem:[#allocation7 + $0x48] sm:$0xff] %v228_v7  ;;  %v230_v10 = vpop.f32.mrb[19].mxu0  ;;  %480 = vst [vmem:[#allocation10 + $0x78] sm:$0xff] %v464_v14  ;;  %v463_v17 = vsel %vm448_vm0, 1.0, %v405_v15 }
 0x144   :  { %439 = vst [vmem:[#allocation8 + $0x48] sm:$0xff] %v230_v10  ;;  %479 = vst [vmem:[#allocation10 + $0x70] sm:$0xff] %v463_v17 }
 0x146   :  { %v234_v13 = vpop.f32.mrb[20].mxu0 }
 0x147   :  { %424 = vst [vmem:[#allocation7 + $0x50] sm:$0xff] %v234_v13  ;;  %v236_v16 = vpop.f32.mrb[21].mxu0 }
 0x148   :  { %440 = vst [vmem:[#allocation8 + $0x50] sm:$0xff] %v236_v16 }
 0x14a   :  { %v240_v18 = vpop.f32.mrb[22].mxu0 }
 0x14b   :  { %425 = vst [vmem:[#allocation7 + $0x58] sm:$0xff] %v240_v18  ;;  %v242_v19 = vpop.f32.mrb[23].mxu0 }
 0x14c   :  { %441 = vst [vmem:[#allocation8 + $0x58] sm:$0xff] %v242_v19 }
 0x14e   :  { %v246_v20 = vpop.f32.mrb[24].mxu0 }
 0x14f   :  { %426 = vst [vmem:[#allocation7 + $0x60] sm:$0xff] %v246_v20  ;;  %v248_v21 = vpop.f32.mrb[25].mxu0 }
 0x150   :  { %442 = vst [vmem:[#allocation8 + $0x60] sm:$0xff] %v248_v21 }
 0x152   :  { %v252_v22 = vpop.f32.mrb[26].mxu0 }
 0x153   :  { %427 = vst [vmem:[#allocation7 + $0x68] sm:$0xff] %v252_v22  ;;  %v254_v23 = vpop.f32.mrb[27].mxu0 }
 0x154   :  { %443 = vst [vmem:[#allocation8 + $0x68] sm:$0xff] %v254_v23 }
 0x156   :  { %v258_v24 = vpop.f32.mrb[28].mxu0 }
 0x157   :  { %428 = vst [vmem:[#allocation7 + $0x70] sm:$0xff] %v258_v24  ;;  %v260_v25 = vpop.f32.mrb[29].mxu0 }
 0x158   :  { %444 = vst [vmem:[#allocation8 + $0x70] sm:$0xff] %v260_v25 }
 0x15a   :  { %v264_v26 = vpop.f32.mrb[30].mxu0 }
 0x15b   :  { %429 = vst [vmem:[#allocation7 + $0x78] sm:$0xff] %v264_v26  ;;  %v266_v27 = vpop.f32.mrb[31].mxu0 }
 0x15c   :  { %445 = vst [vmem:[#allocation8 + $0x78] sm:$0xff] %v266_v27 }
 0x15d   :  { %747 = shalt.err (!%p744_p6)
}
 0x15e   :  { %s748_s24 = scalar_lea.hbm %s988_s2, 2048 }
 0x15f   :  { %p749_p7 = scmp.ne.s32.totalorder %s988_s2, %s748_s24  ;;  %p752_p8 = scmp.lt.u32.totalorder %s748_s24, %s988_s2 }
 0x161   :  { %p754_p9 = pnand %p752_p8, %p749_p7 }
 0x163   :  { %757 = shalt.err (!%p754_p9)
}
 0x164   :  { %492 = dma.vmem_to_hbm [thread:$0]  %s487_s16, 2048, %s988_s2, [#allocation4], %s811_s25, %s811_s25, %s812_s26  }
 0x165   :  { %s758_s7 = scalar_lea.vmem %s927_s18, 2048  ;;  %p763_p11 = scmp.lt.s32.totalorder %s927_s18, %s927_s18 }
 0x166   :  { %p759_p10 = scmp.ne.s32.totalorder %s927_s18, %s758_s7  ;;  %p764_p12 = scmp.lt.s32.totalorder %s758_s7, %s758_s7 }
 0x168   :  { %p765_p13 = por %p764_p12, %p763_p11 }
 0x16a   :  { %p766_p0 = pnand %p765_p13, %p759_p10 }
 0x16c   :  { %769 = shalt.err (!%p766_p0)
}
 0x16d   :  { %s770_s10 = scalar_lea.hbm %s989_s3, 2048 }
 0x16e   :  { %p771_p1 = scmp.ne.s32.totalorder %s989_s3, %s770_s10  ;;  %p774_p2 = scmp.lt.u32.totalorder %s770_s10, %s989_s3 }
 0x170   :  { %p776_p3 = pnand %p774_p2, %p771_p1 }
 0x172   :  { %779 = shalt.err (!%p776_p3)
}
 0x173   :  { %504 = dma.vmem_to_hbm [thread:$0]  %s927_s18, 2048, %s989_s3, [#allocation9], %s811_s25, %s811_s25, %s812_s26  }
 0x174   :  { %s780_s15 = scalar_lea.vmem %s929_s20, 2048  ;;  %p785_p5 = scmp.lt.s32.totalorder %s929_s20, %s929_s20 }
 0x175   :  { %p781_p4 = scmp.ne.s32.totalorder %s929_s20, %s780_s15  ;;  %p786_p6 = scmp.lt.s32.totalorder %s780_s15, %s780_s15 }
 0x177   :  { %p787_p7 = por %p786_p6, %p785_p5 }
 0x179   :  { %p788_p8 = pnand %p787_p7, %p781_p4 }
 0x17b   :  { %791 = shalt.err (!%p788_p8)
}
 0x17c   :  { %s792_s17 = scalar_lea.hbm %s990_s4, 2048 }
 0x17d   :  { %p793_p9 = scmp.ne.s32.totalorder %s990_s4, %s792_s17  ;;  %p796_p10 = scmp.lt.u32.totalorder %s792_s17, %s990_s4 }
 0x17f   :  { %p798_p11 = pnand %p796_p10, %p793_p9 }
 0x181   :  { %801 = shalt.err (!%p798_p11)
}
 0x182   :  { %516 = dma.vmem_to_hbm [thread:$0]  %s929_s20, 2048, %s990_s4, [#allocation9], %s811_s25, %s811_s25, %s812_s26  }
 0x183   :  { %806 = dma.done.wait [#allocation4], 2048  }
 0x184   :  { %807 = vsyncadd [#allocation4], 4294965248 }
 0x185   :  { %808 = dma.done.wait [#allocation9], 4096  }
 0x186   :  { %809 = vsyncadd [#allocation9], 4294963200 }
 0x187   :  { %526 = vsyncpa [#allocation3], 1 }
 0x188   :  { %527 = vsyncpa [#allocation6], 1 }
 0x189   :  { %528 = vsyncpa [#allocation4], 1 }
 0x18a   :  { %529 = vsyncpa [#allocation9], 1 }

</bundles_post_ra>
